<compile_context>
chip_gen: v6e
topology: v6e:2x2x1
jax: 0.10.0
libtpu: 0.0.40
codegen_flags: <defaults>
</compile_context>

<pallas_src>
import jax
import jax.numpy as jnp
from jax.experimental import pallas as pl
from jax.experimental.pallas import tpu as pltpu

_LANE = 128
_TARGET_STEPS = 4                    # >= 2 so v7x can shard across its 2 TCs
_MAX_BLOCK_BYTES = 4 * 1024 * 1024   # per-buffer padded-VMEM budget (f32 accounting)


def _round_up(x, m):
    return -(-x // m) * m


def _clip_boxes_kernel(wh_ref, boxes_ref, out_ref):
    # boxes_ref / out_ref: (B, tile_lanes) VMEM tile; wh_ref: (2,) f32 in SMEM.
    b = boxes_ref[...].astype(jnp.float32)
    lanes = b.shape[-1]

    # Coordinate index per lane: 0->x1, 1->y1, 2->x2, 3->y2.
    coord = jax.lax.broadcasted_iota(jnp.int32, (1, lanes), 1) & 3

    w = wh_ref[0]
    h = wh_ref[1]
    zero = jnp.float32(0.0)
    ninf = jnp.float32(-jnp.inf)
    pinf = jnp.float32(jnp.inf)

    lo = jnp.where(coord < 2, zero, ninf)                            # min=0 for x1,y1
    hi = jnp.where(coord == 2, w, jnp.where(coord == 3, h, pinf))    # max=W / max=H

    # Note: for bf16 inputs the clamp happens in f32 and is cast back, so a
    # clipped coordinate can round to a bf16 value slightly above W/H.
    out_ref[...] = jnp.minimum(jnp.maximum(b, lo), hi).astype(out_ref.dtype)


def clip_boxes(boxes, img):
    """Functional equivalent of ClipBoxes.forward(boxes, img)."""
    _, _, height, width = img.shape
    B, N, four = boxes.shape
    assert four == 4
    dtype = boxes.dtype

    total_lanes = N * 4
    slab = boxes.reshape(B, total_lanes)          # free: collapse trailing dims
    wh = jnp.array([width, height], dtype=jnp.float32)

    # Tile sizing: >= _TARGET_STEPS grid steps when possible, 128-multiple lane
    # width, capped so the (sublane-padded) block footprint stays <= 4 MiB.
    padded_rows = _round_up(B, 8)
    max_tile_lanes = max(
        _LANE, (_MAX_BLOCK_BYTES // (padded_rows * 4)) // _LANE * _LANE)
    tile_lanes = _round_up(pl.cdiv(total_lanes, _TARGET_STEPS), _LANE)
    tile_lanes = min(tile_lanes, max_tile_lanes)
    if tile_lanes >= total_lanes:
        tile_lanes = total_lanes                  # single full-width block
    grid = (pl.cdiv(total_lanes, tile_lanes),)

    out = pl.pallas_call(
        _clip_boxes_kernel,
        out_shape=jax.ShapeDtypeStruct((B, total_lanes), dtype),
        grid=grid,
        in_specs=[
            pl.BlockSpec(memory_space=pltpu.MemorySpace.SMEM),   # (2,) W,H scalars
            pl.BlockSpec((B, tile_lanes), lambda i: (0, i)),
        ],
        out_specs=pl.BlockSpec((B, tile_lanes), lambda i: (0, i)),
        compiler_params=pltpu.CompilerParams(
            dimension_semantics=("parallel",),
            vmem_limit_bytes=32 * 1024 * 1024,
        ),
    )(wh, slab)

    return out.reshape(B, N, 4)


def _reference_clip_boxes(boxes, img):
    _, _, height, width = img.shape
    x1 = jnp.maximum(boxes[:, :, 0], 0.0)
    y1 = jnp.maximum(boxes[:, :, 1], 0.0)
    x2 = jnp.minimum(boxes[:, :, 2], float(width))
    y2 = jnp.minimum(boxes[:, :, 3], float(height))
    return jnp.stack([x1, y1, x2, y2], axis=-1)


if __name__ == "__main__":
    key = jax.random.PRNGKey(0)
    k_boxes, k_img, k_boxes2 = jax.random.split(key, 3)

    # Small case consistent with the module spec (single tiny block, grid=(1,)).
    B, N = 2, 8
    C, H, W = 4, 16, 16
    boxes = jax.random.uniform(
        k_boxes, (B, N, 4), jnp.float32, minval=-8.0, maxval=24.0)
    img = jax.random.normal(k_img, (B, C, H, W), jnp.float32)

    out = jax.block_until_ready(clip_boxes(boxes, img))
    ref = _reference_clip_boxes(boxes, img)
    assert out.shape == boxes.shape
    assert jnp.allclose(out, ref, atol=1e-6), "mismatch vs reference (small case)"

    # Larger case: multi-step parallel grid + ragged last block (boundary masking).
    B2, N2 = 2, 1000
    H2, W2 = 37, 53
    boxes2 = jax.random.uniform(
        k_boxes2, (B2, N2, 4), jnp.float32, minval=-20.0, maxval=80.0)
    img2 = jnp.zeros((B2, 3, H2, W2), jnp.float32)

    out2 = jax.block_until_ready(clip_boxes(boxes2, img2))
    ref2 = _reference_clip_boxes(boxes2, img2)
    assert jnp.allclose(out2, ref2, atol=1e-6), "mismatch vs reference (ragged case)"

    print("KERNEL_OK")
</pallas_src>

<mosaic_0001>
module attributes {stable_mosaic.version = 11 : i64} {
  func.func @_clip_boxes_kernel(%arg0: i32, %arg1: memref<2xf32, #tpu.memory_space<smem>>, %arg2: memref<2x32xf32, #tpu.memory_space<vmem>>, %arg3: memref<2x32xf32, #tpu.memory_space<vmem>>) attributes {dimension_semantics = [#tpu.dimension_semantics<parallel>], iteration_bounds = array<i64: 1>, scalar_prefetch = 0 : i64, scratch_operands = 0 : i64, tpu.core_type = #tpu.core_type<tc>, window_params = [{transform_indices = @transform_0, window_bounds = array<i64: 2>}, {transform_indices = @transform_1, window_bounds = array<i64: 2, 32>}, {transform_indices = @transform_2, window_bounds = array<i64: 2, 32>}]} {
    %c0 = arith.constant 0 : index
    %c0_0 = arith.constant 0 : index
    %0 = vector.load %arg2[%c0, %c0_0] : memref<2x32xf32, #tpu.memory_space<vmem>>, vector<2x32xf32>
    %1 = tpu.iota {dimensions = array<i32: 1>} : vector<1x32xi32>
    %c3_i32 = arith.constant 3 : i32
    %2 = vector.broadcast %c3_i32 : i32 to vector<1x32xi32>
    %3 = arith.andi %1, %2 : vector<1x32xi32>
    %c0_1 = arith.constant 0 : index
    %4 = memref.load %arg1[%c0_1] : memref<2xf32, #tpu.memory_space<smem>>
    %c1 = arith.constant 1 : index
    %5 = memref.load %arg1[%c1] : memref<2xf32, #tpu.memory_space<smem>>
    %c2_i32 = arith.constant 2 : i32
    %6 = vector.broadcast %c2_i32 : i32 to vector<1x32xi32>
    %7 = arith.cmpi slt, %3, %6 : vector<1x32xi32>
    %cst = arith.constant 0.000000e+00 : f32
    %cst_2 = arith.constant 0xFF800000 : f32
    %8 = vector.broadcast %cst : f32 to vector<1x32xf32>
    %9 = vector.broadcast %cst_2 : f32 to vector<1x32xf32>
    %10 = arith.select %7, %8, %9 : vector<1x32xi1>, vector<1x32xf32>
    %c2_i32_3 = arith.constant 2 : i32
    %11 = vector.broadcast %c2_i32_3 : i32 to vector<1x32xi32>
    %12 = arith.cmpi eq, %3, %11 : vector<1x32xi32>
    %c3_i32_4 = arith.constant 3 : i32
    %13 = vector.broadcast %c3_i32_4 : i32 to vector<1x32xi32>
    %14 = arith.cmpi eq, %3, %13 : vector<1x32xi32>
    %cst_5 = arith.constant 0x7F800000 : f32
    %15 = vector.broadcast %5 : f32 to vector<1x32xf32>
    %16 = vector.broadcast %cst_5 : f32 to vector<1x32xf32>
    %17 = arith.select %14, %15, %16 : vector<1x32xi1>, vector<1x32xf32>
    %18 = vector.broadcast %4 : f32 to vector<1x32xf32>
    %19 = arith.select %12, %18, %17 : vector<1x32xi1>, vector<1x32xf32>
    %20 = vector.broadcast %10 : vector<1x32xf32> to vector<2x32xf32>
    %21 = arith.maximumf %0, %20 : vector<2x32xf32>
    %22 = vector.broadcast %19 : vector<1x32xf32> to vector<2x32xf32>
    %23 = arith.minimumf %21, %22 : vector<2x32xf32>
    %c0_6 = arith.constant 0 : index
    %c0_7 = arith.constant 0 : index
    %24 = vector.load %arg3[%c0_6, %c0_7] : memref<2x32xf32, #tpu.memory_space<vmem>>, vector<2x32xf32>
    tpu.vector_store %arg3[%c0_6, %c0_7], %23 {strides = array<i32>} : memref<2x32xf32, #tpu.memory_space<vmem>>, vector<2x32xf32>,
    return
  }
  func.func @transform_0(%arg0: i32) -> i32 {
    %c0_i32 = arith.constant 0 : i32
    %c0_i32_0 = arith.constant 0 : i32
    return %c0_i32 : i32
  }
  func.func @transform_1(%arg0: i32) -> (i32, i32) {
    %c0_i32 = arith.constant 0 : i32
    %c0_i32_0 = arith.constant 0 : i32
    return %c0_i32, %arg0 : i32, i32
  }
  func.func @transform_2(%arg0: i32) -> (i32, i32) {
    %c0_i32 = arith.constant 0 : i32
    %c0_i32_0 = arith.constant 0 : i32
    return %c0_i32, %arg0 : i32, i32
  }
}

</mosaic_0001>

<bundles_post_ra>
// kernel: tpu_custom_call.1
= control target key start
LH: loop header
LB: loop body
LE: loop exit
PB: predicated region body
PF: predicated region fallthrough
CT: control target
= control target key end

     0   :  { %7 = vsyncpa [#allocation5], 0  ;;  %s156_s0 = inlined_call_operand.hbm [shape: f32[2], index: 0, kind: input, shape index: {}]   ;;  %s157_s1 = inlined_call_operand.hbm [shape: f32[2,32], index: 1, kind: input, shape index: {}]   ;;  %s158_s2 = inlined_call_operand.hbm [shape: f32[2,32], index: 2, kind: output, shape index: {}]  }
   0x1   :  { %8 = vsyncpa [#allocation3], 0 }
   0x2   :  { %9 = vsyncpa [#allocation4], 0  ;;  %s128_s9 = smov [#allocation2]   ;;  %s129_s12 = smov [#allocation6]  }
   0x3   :  { %17 = dma.hbm_to_smem %s156_s0, 16, %s128_s9, [#allocation5]  }
   0x4   :  { %s24_s13 = sshll.u32 %s129_s12, 4  ;;  %s25_s13 = int_to_ptr.vmem [resolvable:$true] %s24_s13 }
   0x5   :  { %s90_s14 = scalar_lea.vmem %s25_s13, 32  ;;  %p95_p1 = scmp.lt.s32.totalorder %s25_s13, %s25_s13 }
   0x6   :  { %p91_p0 = scmp.ne.s32.totalorder %s25_s13, %s90_s14  ;;  %p96_p2 = scmp.lt.s32.totalorder %s90_s14, %s90_s14 }
   0x8   :  { %p97_p3 = por %p96_p2, %p95_p1 }
   0xa   :  { %p98_p4 = pnand %p97_p3, %p91_p0 }
   0xc   :  { %101 = shalt.err (!%p98_p4)
}
   0xd   :  { %27 = dma.hbm_to_vmem [thread:$0]  %s157_s1, 32, %s25_s13, [#allocation3]  }
   0xe   :  { %122 = dma.done.wait [#allocation5], 16  }
   0xf   :  { %123 = vsyncadd [#allocation5], 4294967280 }
  0x10   :  { %124 = dma.done.wait [#allocation3], 32  }
  0x11   :  { %125 = vsyncadd [#allocation3], 4294967264 }
  0x12   :  { %34 = sfence }
  0x13   :  { %v36_v0 = vlaneseq  ;;  %s39_s0 = sld [smem:[#allocation2]]  ;;  %v35_v3 = vld [vmem:[#allocation6] sm:$0x3]  ;;  %v130_v5 = vmov -inf   ;;  %s131_s18 = smov [#allocation7]   ;;  %vm51_vm3 = vcmask 254976  }
  0x14   :  { %s69_s17 = sld [smem:[#allocation2 + $0x1]]  ;;  %s59_s1 = sshll.u32 %s131_s18, 4  ;;  %s60_s1 = int_to_ptr.vmem [resolvable:$true] %s59_s1 }
  0x15   :  { %v37_v1 = vand.u32 127, %v36_v0  ;;  %s102_s19 = scalar_lea.vmem %s60_s1, 32  ;;  %p107_p6 = scmp.lt.s32.totalorder %s60_s1, %s60_s1 }
  0x16   :  { %p103_p5 = scmp.ne.s32.totalorder %s60_s1, %s102_s19  ;;  %p108_p7 = scmp.lt.s32.totalorder %s102_s19, %s102_s19 }
  0x17   :  { %v38_v2 = vand.u32 3, %v37_v1 }
  0x18   :  { %p109_p8 = por %p108_p7, %p107_p6 }
  0x19   :  { %vm41_vm0 = vcmp.lt.s32.totalorder %v38_v2, 2  ;;  %vm43_vm1 = vcmp.eq.s32.totalorder %v38_v2, 2  ;;  %vm44_vm2 = vcmp.eq.s32.totalorder %v38_v2, 3  ;;  %v47_v4 = vstv %s39_s0 }
  0x1a   :  { %v42_v6 = vsel %vm41_vm0, 0.0, %v130_v5  ;;  %v45_v7 = vstv %s69_s17  ;;  %p110_p9 = pnand %p109_p8, %p103_p5 }
  0x1b   :  { %v46_v8 = vsel %vm44_vm2, %v45_v7, inf  ;;  %v49_v9 = vmax.f32 %v35_v3, %v42_v6 }
  0x1c   :  { %v48_v10 = vsel %vm43_vm1, %v47_v4, %v46_v8 }
  0x1d   :  { %v50_v11 = vmin.f32 %v49_v9, %v48_v10 }
  0x1f   :  { %52 = vst.msk [vmem:[#allocation7] sm:$0x3] %vm51_vm3, %v50_v11 }
  0x20   :  { %113 = shalt.err (!%p110_p9)
}
  0x21   :  { %62 = dma.vmem_to_hbm [thread:$0]  %s60_s1, 32, %s158_s2, [#allocation4]  }
  0x22   :  { %126 = dma.done.wait [#allocation4], 32  }
  0x23   :  { %127 = vsyncadd [#allocation4], 4294967264 }
  0x24   :  { %66 = vsyncpa [#allocation3], 1 }
  0x25   :  { %67 = vsyncpa [#allocation4], 1 }
  0x26   :  { %68 = vsyncpa [#allocation5], 1 }

</bundles_post_ra>
